<compile_context>
chip_gen: v5e
topology: v5e:2x2
jax: 0.10.0
libtpu: 0.0.40
codegen_flags: <defaults>
</compile_context>

<pallas_src>
import functools

import jax
import jax.numpy as jnp
from jax.experimental import pallas as pl
from jax.experimental.pallas import tpu as pltpu


def _conv1x1_bn_relu_kernel(x_ref, w_ref, shift_ref, o_ref):
    # x_ref:     (C_in, tp)   pixel tile, pixels on the lane axis
    # w_ref:     (C_out, C_in) 1x1 conv weight with BN scale pre-folded
    # shift_ref: (C_out, 1)   folded BN shift = beta - mean * scale
    # o_ref:     (C_out, tp)  output tile, pixels on the lane axis (lane-dense)
    y = jnp.dot(w_ref[...], x_ref[...], preferred_element_type=jnp.float32)  # (C_out, tp)
    y = y + shift_ref[...]                                                   # broadcast over pixels
    o_ref[...] = jnp.maximum(y, 0.0).astype(o_ref.dtype)


def _pick_pixel_tile(hw, c_in, c_out, itemsize, tp):
    """Largest lane-dense pixel tile that keeps double-buffered tiles small."""
    if hw <= tp:
        return hw  # full extent is always a legal block size
    # Keep (input + output) tile bytes under ~6 MiB; double-buffering makes it
    # ~12 MiB — comfortably inside the default scoped-VMEM limit on all chips.
    budget_bytes = 6 << 20
    per_pixel = (c_in + c_out) * itemsize
    cap = max(128, (budget_bytes // per_pixel) // 128 * 128)
    return min(tp, cap)


@functools.partial(jax.jit, static_argnames=("tp",))
def depthwise_conv_block(x_nchw, w, gamma, beta, running_mean, running_var,
                         eps=1e-5, tp=2048):
    """Forward pass of DepthWiseConvBlock (eval-mode BatchNorm).

    x_nchw: (N, C_in, H, W)
    w:      (C_out, C_in)   1x1 conv weight (PyTorch weight[:, :, 0, 0])
    """
    n, c_in, h, wd = x_nchw.shape
    c_out = w.shape[0]
    hw = h * wd

    # Fold BN (inference) into the weight + a per-output-channel shift.
    scale = gamma * jax.lax.rsqrt(running_var + eps)                 # (C_out,)
    shift = (beta - running_mean * scale).reshape(c_out, 1)          # (C_out, 1)
    shift = shift.astype(jnp.float32)
    w_scaled = (w * scale[:, None]).astype(x_nchw.dtype)             # (C_out, C_in)

    # Free reshape — pixels become the minor (lane) axis, no transpose.
    x_flat = x_nchw.reshape(n, c_in, hw)

    tile = _pick_pixel_tile(hw, c_in, c_out, x_nchw.dtype.itemsize, tp)
    grid = (n, pl.cdiv(hw, tile))

    out_flat = pl.pallas_call(
        _conv1x1_bn_relu_kernel,
        out_shape=jax.ShapeDtypeStruct((n, c_out, hw), x_nchw.dtype),
        grid_spec=pltpu.PrefetchScalarGridSpec(
            num_scalar_prefetch=0,
            grid=grid,
            in_specs=[
                # Batch dim squeezed out of the kernel view; constant index_map
                # for the tiny weight/shift so they stay resident in VMEM.
                pl.BlockSpec((pl.Squeezed(), c_in, tile), lambda b, p: (b, 0, p)),
                pl.BlockSpec((c_out, c_in), lambda b, p: (0, 0)),
                pl.BlockSpec((c_out, 1), lambda b, p: (0, 0)),
            ],
            out_specs=pl.BlockSpec((pl.Squeezed(), c_out, tile),
                                   lambda b, p: (b, 0, p)),
        ),
        compiler_params=pltpu.CompilerParams(
            dimension_semantics=("parallel", "parallel")),
    )(x_flat, w_scaled, shift)

    return out_flat.reshape(n, c_out, h, wd)


def _reference(x_nchw, w, gamma, beta, running_mean, running_var, eps=1e-5):
    # Pure-JAX reference: 1x1 conv == einsum over channels, then BN + ReLU.
    y = jnp.einsum("nchw,oc->nohw", x_nchw, w)
    scale = gamma * jax.lax.rsqrt(running_var + eps)
    shift = beta - running_mean * scale
    y = y * scale[None, :, None, None] + shift[None, :, None, None]
    return jnp.maximum(y, 0.0)


if __name__ == "__main__":
    key = jax.random.PRNGKey(0)
    k_x, k_w, k_g, k_b, k_m, k_v = jax.random.split(key, 6)

    N, C_IN, H, W = 2, 4, 16, 16
    C_OUT = 8

    x = jax.random.normal(k_x, (N, C_IN, H, W), dtype=jnp.float32)
    # Conv2d(in=4, out=8, k=1, bias=False) weight -> (C_out, C_in, 1, 1); keep (C_out, C_in).
    w = jax.random.normal(k_w, (C_OUT, C_IN), dtype=jnp.float32) * 0.1
    # BatchNorm2d parameters / running stats (deterministic, non-trivial).
    gamma = 1.0 + 0.1 * jax.random.normal(k_g, (C_OUT,), dtype=jnp.float32)
    beta = 0.1 * jax.random.normal(k_b, (C_OUT,), dtype=jnp.float32)
    running_mean = 0.1 * jax.random.normal(k_m, (C_OUT,), dtype=jnp.float32)
    running_var = 1.0 + 0.1 * jax.random.uniform(k_v, (C_OUT,), dtype=jnp.float32)

    out = depthwise_conv_block(x, w, gamma, beta, running_mean, running_var)
    out = jax.block_until_ready(out)

    ref = _reference(x, w, gamma, beta, running_mean, running_var)
    assert out.shape == (N, C_OUT, H, W), out.shape
    assert jnp.allclose(out, ref, atol=1e-5, rtol=1e-5), "mismatch vs reference"

    print("KERNEL_OK")
</pallas_src>

<mosaic_0001>
module attributes {stable_mosaic.version = 11 : i64} {
  func.func @_conv1x1_bn_relu_kernel(%arg0: i32, %arg1: i32, %arg2: memref<1x4x256xf32, #tpu.memory_space<vmem>>, %arg3: memref<8x4xf32, #tpu.memory_space<vmem>>, %arg4: memref<8x1xf32, #tpu.memory_space<vmem>>, %arg5: memref<1x8x256xf32, #tpu.memory_space<vmem>>) attributes {dimension_semantics = [#tpu.dimension_semantics<parallel>, #tpu.dimension_semantics<parallel>], iteration_bounds = array<i64: 2, 1>, scalar_prefetch = 0 : i64, scratch_operands = 0 : i64, tpu.core_type = #tpu.core_type<tc>, window_params = [{transform_indices = @transform_0, window_bounds = array<i64: 1, 4, 256>}, {pipeline_mode = #tpu.pipeline_mode<synchronous>, transform_indices = @transform_1, window_bounds = array<i64: 8, 4>}, {pipeline_mode = #tpu.pipeline_mode<synchronous>, transform_indices = @transform_2, window_bounds = array<i64: 8, 1>}, {transform_indices = @transform_3, window_bounds = array<i64: 1, 8, 256>}]} {
    %c0 = arith.constant 0 : index
    %c0_0 = arith.constant 0 : index
    %0 = vector.load %arg3[%c0, %c0_0] : memref<8x4xf32, #tpu.memory_space<vmem>>, vector<8x4xf32>
    %c0_1 = arith.constant 0 : index
    %c0_2 = arith.constant 0 : index
    %c0_3 = arith.constant 0 : index
    %1 = vector.load %arg2[%c0_1, %c0_2, %c0_3] : memref<1x4x256xf32, #tpu.memory_space<vmem>>, vector<1x4x256xf32>
    %2 = vector.shape_cast %1 : vector<1x4x256xf32> to vector<4x256xf32>
    %cst = arith.constant dense<0.000000e+00> : vector<8x256xf32>
    %3 = tpu.matmul %0, %2, %cst {dimension_numbers = #tpu.dot_dimension_numbers<[1], [0], [0], [1], [0, 0, 1, 1], [], []>} : vector<8x4xf32>, vector<4x256xf32>, vector<8x256xf32> -> vector<8x256xf32>
    %c0_4 = arith.constant 0 : index
    %c0_5 = arith.constant 0 : index
    %4 = vector.load %arg4[%c0_4, %c0_5] : memref<8x1xf32, #tpu.memory_space<vmem>>, vector<8x1xf32>
    %5 = vector.broadcast %4 : vector<8x1xf32> to vector<8x256xf32>
    %6 = arith.addf %3, %5 : vector<8x256xf32>
    %cst_6 = arith.constant 0.000000e+00 : f32
    %7 = vector.broadcast %cst_6 : f32 to vector<8x256xf32>
    %8 = arith.maximumf %6, %7 : vector<8x256xf32>
    %c0_7 = arith.constant 0 : index
    %c0_8 = arith.constant 0 : index
    %c0_9 = arith.constant 0 : index
    %9 = vector.load %arg5[%c0_7, %c0_8, %c0_9] : memref<1x8x256xf32, #tpu.memory_space<vmem>>, vector<1x8x256xf32>
    %10 = vector.shape_cast %9 : vector<1x8x256xf32> to vector<8x256xf32>
    %11 = vector.shape_cast %8 : vector<8x256xf32> to vector<1x8x256xf32>
    tpu.vector_store %arg5[%c0_7, %c0_8, %c0_9], %11 {strides = array<i32>} : memref<1x8x256xf32, #tpu.memory_space<vmem>>, vector<1x8x256xf32>,
    return
  }
  func.func @transform_0(%arg0: i32, %arg1: i32) -> (i32, i32, i32) {
    %c0_i32 = arith.constant 0 : i32
    %c0_i32_0 = arith.constant 0 : i32
    return %arg0, %c0_i32, %arg1 : i32, i32, i32
  }
  func.func @transform_1(%arg0: i32, %arg1: i32) -> (i32, i32) {
    %c0_i32 = arith.constant 0 : i32
    %c0_i32_0 = arith.constant 0 : i32
    %c0_i32_1 = arith.constant 0 : i32
    return %c0_i32, %c0_i32_0 : i32, i32
  }
  func.func @transform_2(%arg0: i32, %arg1: i32) -> (i32, i32) {
    %c0_i32 = arith.constant 0 : i32
    %c0_i32_0 = arith.constant 0 : i32
    %c0_i32_1 = arith.constant 0 : i32
    return %c0_i32, %c0_i32_0 : i32, i32
  }
  func.func @transform_3(%arg0: i32, %arg1: i32) -> (i32, i32, i32) {
    %c0_i32 = arith.constant 0 : i32
    %c0_i32_0 = arith.constant 0 : i32
    return %arg0, %c0_i32, %arg1 : i32, i32, i32
  }
}

</mosaic_0001>

<bundles_post_ra>
// kernel: depthwise_conv_block.1
= control target key start
LH: loop header
LB: loop body
LE: loop exit
PB: predicated region body
PF: predicated region fallthrough
CT: control target
= control target key end

     0   :  { %s450_s12 = smov 0   ;;  %s452_s13 = smov 0   ;;  %s489_s0 = inlined_call_operand.vmem [shape: f32[2,4,256], index: 0, kind: input, shape index: {}]   ;;  %s490_s1 = inlined_call_operand.vmem [shape: f32[8,4], index: 1, kind: input, shape index: {}]   ;;  %s491_s2 = inlined_call_operand.vmem [shape: f32[8,1], index: 2, kind: input, shape index: {}]   ;;  %s492_s3 = inlined_call_operand.vmem [shape: f32[2,8,256], index: 3, kind: output, shape index: {}]  }
   0x1   :  { %s454_s14 = smov 0  }
   0x2 LB: > { %s25_s15 = sadd.s32 1, %s423_s13  ;;  %p366_p0 = scmp.ge.s32.totalorder %s427_s14, 1  ;;  %s427_s14 = sphi %s454_s14, %s13_s14   ;;  %s423_s13 = sphi %s452_s13, %s494_s13   ;;  %s419_s12 = sphi %s450_s12, %s493_s12  }
   0x3   : > { %p27_p1 = scmp.ge.s32.totalorder %s25_s15, 2  ;;  %p158_p2 = scmp.lt.s32.totalorder %s427_s14, 3 }
   0x5   : > { %s496_s15 = smov (%p27_p1, %s25_s15), 0  ;;  %p159_p3 = pnand %p366_p0, %p158_p2 }
   0x6   : > { %p191_p4 = scmp.lt.s32.totalorder (!%p159_p3), %s419_s12, 1 }
   0x7   : > { %162 = sbr.rel (%p159_p3) target bundleno = 157 (0x9d), region = 32 }
   0xc   : > { %v212_v0 = vld [vmem:[%s491_s2] sm:$0xff]  ;;  %v429_v1 = vmov 0   ;;  %s498_s12 = smov (!%p191_p4, %s419_s12), 1  ;;  %vm226_vm0 = vcmask 1043456   ;;  %vm222_vm1 = vcmask 31744  }
   0xd   : > { %404 = vset.pattern.permute.xlu0 %v429_v1  ;;  %s377_s18 = sshll.u32 %s498_s12, 3  ;;  %v210_v3 = vld [vmem:[%s490_s1] sm:$0xff]  ;;  %s378_s24 = sshll.u32 %s498_s12, 4 }
   0xe   : > { %215 = vperm.xlu0 %404, %v212_v0   ;;  %s198_s21 = scalar_lea.vmem %s489_s0, %s377_s18  ;;  %s208_s27 = scalar_lea.vmem %s492_s3, %s378_s24 }
   0xf   : > { %v211_v2 = vld [vmem:[%s198_s21] sm:$0xff] }
  0x10   : > { %219 = vst [vmem:[#allocation1] ss:$2 sm:$0xff] %v211_v2 }
  0x17   : > { %v220_v4 = vld.sshfl [vmem:[#allocation1] sm:$0xff pattern:$0x75316420]  ;;  %v221_v5 = vld.sshfl [vmem:[#allocation1 + $0x8] sm:$0xff pattern:$0x75316420] }
  0x18   : > { %371 = vmatpush.msk.msra.mxu0 %vm226_vm0, %v220_v4  ;;  %373 = vmatpush.msk.msra.mxu1 %vm226_vm0, %v221_v5 }
  0x19   : > { %372 = vmatmul.msk.f32.vlgmr.msra.gmra.mxu0 %vm222_vm1, %v210_v3  ;;  %374 = vmatmul.msk.f32.vlgmr.msra.gmra.mxu1 %vm222_vm1, %v210_v3 }
  0x80   : > { %v216_v6 = vpop.permute.xlu0 %215 }
  0x96   : > { %v248_v7 = vpop.f32.mrf.mxu0  ;;  %v268_v8 = vpop.f32.mrf.mxu1 }
  0x97   : > { %v249_v9 = vadd.f32 %v248_v7, %v216_v6  ;;  %v269_v10 = vadd.f32 %v268_v8, %v216_v6 }
  0x99   : > { %v271_v11 = vmax.f32 %v249_v9, 0.0  ;;  %v272_v12 = vmax.f32 %v269_v10, 0.0 }
  0x9b   : > { %273 = vst [vmem:[%s208_s27] sm:$0xff] %v271_v11 }
  0x9c   : > { %274 = vst [vmem:[%s208_s27 + $0x8] sm:$0xff] %v272_v12 }
  0x9d PF: > { %s13_s14 = sadd.s32 1, %s427_s14   ;;  %s493_s12 = smov %s423_s13 }
  0x9e   : > { %p10_p5 = scmp.ge.s32.totalorder %s13_s14, 4   ;;  %s494_s13 = smov %s496_s15 }
  0xa0   :  { %12 = sbr.rel (!%p10_p5) target bundleno = 2 (0x2), region = 62 }

</bundles_post_ra>
